<compile_context>
chip_gen: v5e
topology: v5e:2x2
jax: 0.10.0
libtpu: 0.0.40
codegen_flags: <defaults>
</compile_context>

<pallas_src>
import jax
import jax.numpy as jnp
from jax.experimental import pallas as pl
from jax.experimental.pallas import tpu as pltpu

# ---- model hyper-parameters (small, consistent with the module) -------------
DIM = 128                      # embedding dim
NUM_HEADS = 8
HEAD_DIM = DIM // NUM_HEADS    # 16
MOL_SIZE = 8                   # sequence length (max_atoms)


# ------------------------------ Pallas kernel --------------------------------
def _talking_head_kernel(x_ref, qkv_w_ref, proj_w_ref, proj_b_ref,
                         mix_l_ref, pl_b_ref, mix_w_ref, pw_b_ref, out_ref):
    BB, N, D = x_ref.shape            # batch block, seq, dim
    H = mix_l_ref.shape[1]            # num heads
    R = BB * N                        # folded rows per grid step

    # ---- fused qkv projection: (R, D) @ (D, 3D), bf16 MXU, f32 acc ----------
    x2 = x_ref[...].reshape(R, D)                                    # bf16
    qkv = jnp.dot(x2, qkv_w_ref[...], preferred_element_type=jnp.float32)

    q = qkv[:, :D]                    # lanes ordered (head, head_dim)
    k = qkv[:, D:2 * D]               # 128-lane-aligned column slices
    v = qkv[:, 2 * D:]

    # ---- scores fused with the PRE-softmax talking-heads mix ----------------
    #   prod[(b,n,m), c]   = q[(b,n), c] * k[(b,m), c]        (VPU outer product)
    #   logits[(b,n,m), g] = prod @ mix_l + pl_b              (one dense MXU pass)
    # mix_l[h*HD+d, g] = scale * pl_w[g, h]  folds scale, d-sum and head mix.
    prod = (q.reshape(BB, N, 1, D) * k.reshape(BB, 1, N, D)).astype(jnp.bfloat16)
    logits = jnp.dot(prod.reshape(R * N, D), mix_l_ref[...],
                     preferred_element_type=jnp.float32) + pl_b_ref[...]
    logits = logits.reshape(BB, N, N, H)

    # ---- softmax over keys (axis=2 == sublane axis), f32 --------------------
    mx = jnp.max(logits, axis=2, keepdims=True)
    ex = jnp.exp(logits - mx)
    probs = ex * pl.reciprocal(jnp.sum(ex, axis=2, keepdims=True), approx=True)

    # ---- POST-softmax talking-heads mix fused with head->lane expansion -----
    #   attn[(b,n,m), g*HD+e] = sum_h probs[b,n,m,h] * pw_w[g,h] + pw_b[g]
    attn = jnp.dot(probs.reshape(R * N, H).astype(jnp.bfloat16), mix_w_ref[...],
                   preferred_element_type=jnp.float32) + pw_b_ref[...]
    attn = attn.reshape(BB, N, N, D)

    # ---- attn @ v as a VPU multiply + sublane reduction over keys (f32) -----
    ctx = jnp.sum(attn * v.reshape(BB, 1, N, D), axis=2)             # (BB, N, D)

    # ---- output projection (heads already concatenated on lanes) ------------
    out = jnp.dot(ctx.reshape(R, D).astype(jnp.bfloat16), proj_w_ref[...],
                  preferred_element_type=jnp.float32) + proj_b_ref[...]
    out_ref[...] = out.reshape(BB, N, D)


# ------------------------------ weight preprocessing --------------------------
def prepare_talking_head_weights(p):
    """Call ONCE per parameter set; outputs are small, kernel-ready tensors."""
    D = p['qkv_w'].shape[0]
    H = p['pl_w'].shape[0]
    HD = D // H
    scale = float(HD) ** -0.5

    qkv_w = p['qkv_w'].astype(jnp.bfloat16)                               # (D, 3D)
    proj_w = p['proj_w'].astype(jnp.bfloat16)                             # (D, D)
    proj_b = p['proj_b'].reshape(1, D).astype(jnp.float32)                # (1, D)
    # pre-softmax mix fused with the per-head d-reduction and the q scale
    mix_l = (scale * jnp.repeat(p['pl_w'].T, HD, axis=0)).astype(jnp.bfloat16)  # (D, H)
    pl_b = p['pl_b'].reshape(1, H).astype(jnp.float32)                    # (1, H)
    # post-softmax mix fused with the head -> lane expansion
    mix_w = jnp.repeat(p['pw_w'].T, HD, axis=1).astype(jnp.bfloat16)      # (H, D)
    pw_b = jnp.repeat(p['pw_b'], HD).reshape(1, D).astype(jnp.float32)    # (1, D)
    return (qkv_w, proj_w, proj_b, mix_l, pl_b, mix_w, pw_b)


# ------------------------------ wrapper ---------------------------------------
def _pick_batch_block(batch, seq, target_rows=512):
    # target ~512 folded rows per grid step; keep BB a divisor of the batch.
    bb = min(batch, max(1, target_rows // max(seq, 1)))
    while batch % bb:
        bb -= 1
    return max(bb, 1)


def attention_talking_head_pallas(x, prepped, target_rows=512):
    B, N, D = x.shape
    qkv_w, proj_w, proj_b, mix_l, pl_b, mix_w, pw_b = prepped
    H = mix_l.shape[1]
    assert N % 8 == 0, "sequence length must be a multiple of the 8-sublane tile"
    assert D % H == 0

    BB = _pick_batch_block(B, N, target_rows)
    x_bf = x.astype(jnp.bfloat16)        # halve streaming HBM traffic on input

    weights = [qkv_w, proj_w, proj_b, mix_l, pl_b, mix_w, pw_b]

    def const_spec(a):
        nd = a.ndim
        return pl.BlockSpec(a.shape, lambda i, _nd=nd: (0,) * _nd)

    return pl.pallas_call(
        _talking_head_kernel,
        out_shape=jax.ShapeDtypeStruct((B, N, D), jnp.float32),
        grid=(B // BB,),
        in_specs=([pl.BlockSpec((BB, N, D), lambda i: (i, 0, 0))]
                  + [const_spec(a) for a in weights]),
        out_specs=pl.BlockSpec((BB, N, D), lambda i: (i, 0, 0)),
        compiler_params=pltpu.CompilerParams(
            dimension_semantics=("parallel",),
            vmem_limit_bytes=32 * 1024 * 1024),
    )(x_bf, *weights)


# ------------------------------ pure-JAX reference ----------------------------
def attention_talking_head_ref(x, p):
    B, N, D = x.shape
    H = p['pl_w'].shape[0]
    HD = D // H
    scale = HD ** -0.5
    qkv = x @ p['qkv_w']                                                  # (B,N,3D)
    qkv = qkv.reshape(B, N, 3, H, HD).transpose(2, 0, 3, 1, 4)
    q, k, v = qkv[0] * scale, qkv[1], qkv[2]
    attn = jnp.einsum('bhnd,bhmd->bhnm', q, k)
    attn = jnp.einsum('bhnm,gh->bgnm', attn, p['pl_w']) + p['pl_b'][None, :, None, None]
    attn = jax.nn.softmax(attn, axis=-1)
    attn = jnp.einsum('bhnm,gh->bgnm', attn, p['pw_w']) + p['pw_b'][None, :, None, None]
    out = jnp.einsum('bhnm,bhmd->bhnd', attn, v).transpose(0, 2, 1, 3).reshape(B, N, D)
    return out @ p['proj_w'] + p['proj_b']


# ------------------------------ parameters ------------------------------------
def init_params(key):
    ks = jax.random.split(key, 8)

    def nrm(k, shape, scale):
        return scale * jax.random.normal(k, shape, dtype=jnp.float32)

    H = NUM_HEADS
    return dict(
        qkv_w=nrm(ks[0], (DIM, 3 * DIM), 0.05),        # Linear(dim, 3*dim, bias=False).weight.T
        proj_w=nrm(ks[1], (DIM, DIM), 0.05),            # proj.weight.T
        proj_b=nrm(ks[2], (DIM,), 0.05),
        pl_w=nrm(ks[3], (H, H), 0.2), pl_b=nrm(ks[4], (H,), 0.2),
        pw_w=nrm(ks[5], (H, H), 0.2), pw_b=nrm(ks[6], (H,), 0.2),
    )


if __name__ == "__main__":
    key = jax.random.PRNGKey(0)
    kp, kx = jax.random.split(key)
    params = init_params(kp)

    B, N = 2, MOL_SIZE
    x = jax.random.normal(kx, (B, N, DIM), dtype=jnp.float32)

    prepped = prepare_talking_head_weights(params)     # hoisted, call-once prep
    out = attention_talking_head_pallas(x, prepped)
    out = jax.block_until_ready(out)

    with jax.default_matmul_precision("highest"):
        ref = attention_talking_head_ref(x, params)

    assert out.shape == (B, N, DIM)
    err = float(jnp.max(jnp.abs(out - ref)))
    assert jnp.allclose(out, ref, rtol=2e-2, atol=2e-2), f"max abs err {err}"

    # TODO(synk): attn_drop / proj_drop are eval-mode identities (p=0.0); no RNG path implemented.
    print("KERNEL_OK")
</pallas_src>

<mosaic_0001>
module attributes {stable_mosaic.version = 11 : i64} {
  func.func @_talking_head_kernel(%arg0: i32, %arg1: memref<2x8x128xbf16, #tpu.memory_space<vmem>>, %arg2: memref<128x384xbf16, #tpu.memory_space<vmem>>, %arg3: memref<128x128xbf16, #tpu.memory_space<vmem>>, %arg4: memref<1x128xf32, #tpu.memory_space<vmem>>, %arg5: memref<128x8xbf16, #tpu.memory_space<vmem>>, %arg6: memref<1x8xf32, #tpu.memory_space<vmem>>, %arg7: memref<8x128xbf16, #tpu.memory_space<vmem>>, %arg8: memref<1x128xf32, #tpu.memory_space<vmem>>, %arg9: memref<2x8x128xf32, #tpu.memory_space<vmem>>) attributes {dimension_semantics = [#tpu.dimension_semantics<parallel>], iteration_bounds = array<i64: 1>, scalar_prefetch = 0 : i64, scratch_operands = 0 : i64, tpu.core_type = #tpu.core_type<tc>, window_params = [{transform_indices = @transform_0, window_bounds = array<i64: 2, 8, 128>}, {pipeline_mode = #tpu.pipeline_mode<synchronous>, transform_indices = @transform_1, window_bounds = array<i64: 128, 384>}, {pipeline_mode = #tpu.pipeline_mode<synchronous>, transform_indices = @transform_2, window_bounds = array<i64: 128, 128>}, {pipeline_mode = #tpu.pipeline_mode<synchronous>, transform_indices = @transform_3, window_bounds = array<i64: 1, 128>}, {pipeline_mode = #tpu.pipeline_mode<synchronous>, transform_indices = @transform_4, window_bounds = array<i64: 128, 8>}, {pipeline_mode = #tpu.pipeline_mode<synchronous>, transform_indices = @transform_5, window_bounds = array<i64: 1, 8>}, {pipeline_mode = #tpu.pipeline_mode<synchronous>, transform_indices = @transform_6, window_bounds = array<i64: 8, 128>}, {pipeline_mode = #tpu.pipeline_mode<synchronous>, transform_indices = @transform_7, window_bounds = array<i64: 1, 128>}, {transform_indices = @transform_8, window_bounds = array<i64: 2, 8, 128>}]} {
    %c0 = arith.constant 0 : index
    %c0_0 = arith.constant 0 : index
    %c0_1 = arith.constant 0 : index
    %0 = vector.load %arg1[%c0, %c0_0, %c0_1] : memref<2x8x128xbf16, #tpu.memory_space<vmem>>, vector<2x8x128xbf16>
    %1 = vector.shape_cast %0 : vector<2x8x128xbf16> to vector<16x128xbf16>
    %c0_2 = arith.constant 0 : index
    %c0_3 = arith.constant 0 : index
    %2 = vector.load %arg2[%c0_2, %c0_3] : memref<128x384xbf16, #tpu.memory_space<vmem>>, vector<128x384xbf16>
    %cst = arith.constant dense<0.000000e+00> : vector<16x384xf32>
    %3 = tpu.matmul %1, %2, %cst {dimension_numbers = #tpu.dot_dimension_numbers<[1], [0], [0], [1], [0, 0, 1, 1], [], []>} : vector<16x128xbf16>, vector<128x384xbf16>, vector<16x384xf32> -> vector<16x384xf32>
    %4 = vector.extract_strided_slice %3 {offsets = [0, 0], sizes = [16, 128], strides = [1, 1]} : vector<16x384xf32> to vector<16x128xf32>
    %5 = vector.extract_strided_slice %3 {offsets = [0, 128], sizes = [16, 128], strides = [1, 1]} : vector<16x384xf32> to vector<16x128xf32>
    %6 = vector.extract_strided_slice %3 {offsets = [0, 256], sizes = [16, 128], strides = [1, 1]} : vector<16x384xf32> to vector<16x128xf32>
    %7 = vector.shape_cast %4 : vector<16x128xf32> to vector<2x8x1x128xf32>
    %8 = vector.shape_cast %5 : vector<16x128xf32> to vector<2x1x8x128xf32>
    %9 = vector.broadcast %7 : vector<2x8x1x128xf32> to vector<2x8x8x128xf32>
    %10 = vector.broadcast %8 : vector<2x1x8x128xf32> to vector<2x8x8x128xf32>
    %11 = arith.mulf %9, %10 : vector<2x8x8x128xf32>
    %12 = arith.truncf %11 : vector<2x8x8x128xf32> to vector<2x8x8x128xbf16>
    %13 = vector.shape_cast %12 : vector<2x8x8x128xbf16> to vector<128x128xbf16>
    %c0_4 = arith.constant 0 : index
    %c0_5 = arith.constant 0 : index
    %14 = vector.load %arg5[%c0_4, %c0_5] : memref<128x8xbf16, #tpu.memory_space<vmem>>, vector<128x8xbf16>
    %cst_6 = arith.constant dense<0.000000e+00> : vector<128x8xf32>
    %15 = tpu.matmul %13, %14, %cst_6 {dimension_numbers = #tpu.dot_dimension_numbers<[1], [0], [0], [1], [0, 0, 1, 1], [], []>} : vector<128x128xbf16>, vector<128x8xbf16>, vector<128x8xf32> -> vector<128x8xf32>
    %c0_7 = arith.constant 0 : index
    %c0_8 = arith.constant 0 : index
    %16 = vector.load %arg6[%c0_7, %c0_8] : memref<1x8xf32, #tpu.memory_space<vmem>>, vector<1x8xf32>
    %17 = vector.broadcast %16 : vector<1x8xf32> to vector<128x8xf32>
    %18 = arith.addf %15, %17 : vector<128x8xf32>
    %19 = vector.shape_cast %18 : vector<128x8xf32> to vector<2x8x8x8xf32>
    %cst_9 = arith.constant dense<0xFF800000> : vector<2x8x8xf32>
    %20 = vector.multi_reduction <maximumf>, %19, %cst_9 [2] : vector<2x8x8x8xf32> to vector<2x8x8xf32>
    %21 = vector.shape_cast %20 : vector<2x8x8xf32> to vector<2x8x1x8xf32>
    %22 = vector.broadcast %21 : vector<2x8x1x8xf32> to vector<2x8x8x8xf32>
    %23 = arith.subf %19, %22 : vector<2x8x8x8xf32>
    %24 = math.exp %23 : vector<2x8x8x8xf32>
    %cst_10 = arith.constant dense<0.000000e+00> : vector<2x8x8xf32>
    %25 = vector.multi_reduction <add>, %24, %cst_10 [2] : vector<2x8x8x8xf32> to vector<2x8x8xf32>
    %26 = vector.shape_cast %25 : vector<2x8x8xf32> to vector<2x8x1x8xf32>
    %27 = tpu.reciprocal %26 {approx = true} : vector<2x8x1x8xf32> -> vector<2x8x1x8xf32>
    %28 = vector.broadcast %27 : vector<2x8x1x8xf32> to vector<2x8x8x8xf32>
    %29 = arith.mulf %24, %28 : vector<2x8x8x8xf32>
    %30 = vector.shape_cast %29 : vector<2x8x8x8xf32> to vector<128x8xf32>
    %31 = arith.truncf %30 : vector<128x8xf32> to vector<128x8xbf16>
    %c0_11 = arith.constant 0 : index
    %c0_12 = arith.constant 0 : index
    %32 = vector.load %arg7[%c0_11, %c0_12] : memref<8x128xbf16, #tpu.memory_space<vmem>>, vector<8x128xbf16>
    %cst_13 = arith.constant dense<0.000000e+00> : vector<128x128xf32>
    %33 = tpu.matmul %31, %32, %cst_13 {dimension_numbers = #tpu.dot_dimension_numbers<[1], [0], [0], [1], [0, 0, 1, 1], [], []>} : vector<128x8xbf16>, vector<8x128xbf16>, vector<128x128xf32> -> vector<128x128xf32>
    %c0_14 = arith.constant 0 : index
    %c0_15 = arith.constant 0 : index
    %34 = vector.load %arg8[%c0_14, %c0_15] : memref<1x128xf32, #tpu.memory_space<vmem>>, vector<1x128xf32>
    %35 = vector.broadcast %34 : vector<1x128xf32> to vector<128x128xf32>
    %36 = arith.addf %33, %35 : vector<128x128xf32>
    %37 = vector.shape_cast %36 : vector<128x128xf32> to vector<2x8x8x128xf32>
    %38 = vector.shape_cast %6 : vector<16x128xf32> to vector<2x1x8x128xf32>
    %39 = vector.broadcast %38 : vector<2x1x8x128xf32> to vector<2x8x8x128xf32>
    %40 = arith.mulf %37, %39 : vector<2x8x8x128xf32>
    %cst_16 = arith.constant dense<0.000000e+00> : vector<2x8x128xf32>
    %41 = vector.multi_reduction <add>, %40, %cst_16 [2] : vector<2x8x8x128xf32> to vector<2x8x128xf32>
    %42 = vector.shape_cast %41 : vector<2x8x128xf32> to vector<16x128xf32>
    %43 = arith.truncf %42 : vector<16x128xf32> to vector<16x128xbf16>
    %c0_17 = arith.constant 0 : index
    %c0_18 = arith.constant 0 : index
    %44 = vector.load %arg3[%c0_17, %c0_18] : memref<128x128xbf16, #tpu.memory_space<vmem>>, vector<128x128xbf16>
    %cst_19 = arith.constant dense<0.000000e+00> : vector<16x128xf32>
    %45 = tpu.matmul %43, %44, %cst_19 {dimension_numbers = #tpu.dot_dimension_numbers<[1], [0], [0], [1], [0, 0, 1, 1], [], []>} : vector<16x128xbf16>, vector<128x128xbf16>, vector<16x128xf32> -> vector<16x128xf32>
    %c0_20 = arith.constant 0 : index
    %c0_21 = arith.constant 0 : index
    %46 = vector.load %arg4[%c0_20, %c0_21] : memref<1x128xf32, #tpu.memory_space<vmem>>, vector<1x128xf32>
    %47 = vector.broadcast %46 : vector<1x128xf32> to vector<16x128xf32>
    %48 = arith.addf %45, %47 : vector<16x128xf32>
    %49 = vector.shape_cast %48 : vector<16x128xf32> to vector<2x8x128xf32>
    %c0_22 = arith.constant 0 : index
    %c0_23 = arith.constant 0 : index
    %c0_24 = arith.constant 0 : index
    %50 = vector.load %arg9[%c0_22, %c0_23, %c0_24] : memref<2x8x128xf32, #tpu.memory_space<vmem>>, vector<2x8x128xf32>
    tpu.vector_store %arg9[%c0_22, %c0_23, %c0_24], %49 {strides = array<i32>} : memref<2x8x128xf32, #tpu.memory_space<vmem>>, vector<2x8x128xf32>,
    return
  }
  func.func @transform_0(%arg0: i32) -> (i32, i32, i32) {
    %c0_i32 = arith.constant 0 : i32
    %c0_i32_0 = arith.constant 0 : i32
    %c0_i32_1 = arith.constant 0 : i32
    return %arg0, %c0_i32, %c0_i32_0 : i32, i32, i32
  }
  func.func @transform_1(%arg0: i32) -> (i32, i32) {
    %c0_i32 = arith.constant 0 : i32
    %c0_i32_0 = arith.constant 0 : i32
    %c0_i32_1 = arith.constant 0 : i32
    return %c0_i32, %c0_i32_0 : i32, i32
  }
  func.func @transform_2(%arg0: i32) -> (i32, i32) {
    %c0_i32 = arith.constant 0 : i32
    %c0_i32_0 = arith.constant 0 : i32
    %c0_i32_1 = arith.constant 0 : i32
    return %c0_i32, %c0_i32_0 : i32, i32
  }
  func.func @transform_3(%arg0: i32) -> (i32, i32) {
    %c0_i32 = arith.constant 0 : i32
    %c0_i32_0 = arith.constant 0 : i32
    %c0_i32_1 = arith.constant 0 : i32
    return %c0_i32, %c0_i32_0 : i32, i32
  }
  func.func @transform_4(%arg0: i32) -> (i32, i32) {
    %c0_i32 = arith.constant 0 : i32
    %c0_i32_0 = arith.constant 0 : i32
    %c0_i32_1 = arith.constant 0 : i32
    return %c0_i32, %c0_i32_0 : i32, i32
  }
  func.func @transform_5(%arg0: i32) -> (i32, i32) {
    %c0_i32 = arith.constant 0 : i32
    %c0_i32_0 = arith.constant 0 : i32
    %c0_i32_1 = arith.constant 0 : i32
    return %c0_i32, %c0_i32_0 : i32, i32
  }
  func.func @transform_6(%arg0: i32) -> (i32, i32) {
    %c0_i32 = arith.constant 0 : i32
    %c0_i32_0 = arith.constant 0 : i32
    %c0_i32_1 = arith.constant 0 : i32
    return %c0_i32, %c0_i32_0 : i32, i32
  }
  func.func @transform_7(%arg0: i32) -> (i32, i32) {
    %c0_i32 = arith.constant 0 : i32
    %c0_i32_0 = arith.constant 0 : i32
    %c0_i32_1 = arith.constant 0 : i32
    return %c0_i32, %c0_i32_0 : i32, i32
  }
  func.func @transform_8(%arg0: i32) -> (i32, i32, i32) {
    %c0_i32 = arith.constant 0 : i32
    %c0_i32_0 = arith.constant 0 : i32
    %c0_i32_1 = arith.constant 0 : i32
    return %arg0, %c0_i32, %c0_i32_0 : i32, i32, i32
  }
}

</mosaic_0001>

<bundles_post_ra>
// kernel: tpu_custom_call.1
= control target key start
LH: loop header
LB: loop body
LE: loop exit
PB: predicated region body
PF: predicated region fallthrough
CT: control target
= control target key end

     0   :  { %13 = vsyncpa [#allocation3], 0  ;;  %s1899_s0 = inlined_call_operand.hbm [shape: bf16[2,8,128], index: 0, kind: input, shape index: {}]   ;;  %s1900_s1 = inlined_call_operand.hbm [shape: bf16[128,384], index: 1, kind: input, shape index: {}]   ;;  %s1901_s2 = inlined_call_operand.vmem [shape: bf16[128,128], index: 2, kind: input, shape index: {}]   ;;  %s1902_s3 = inlined_call_operand.vmem [shape: f32[1,128], index: 3, kind: input, shape index: {}]   ;;  %s1903_s4 = inlined_call_operand.vmem [shape: bf16[128,8], index: 4, kind: input, shape index: {}]   ;;  %s1904_s5 = inlined_call_operand.vmem [shape: f32[1,8], index: 5, kind: input, shape index: {}]   ;;  %s1905_s6 = inlined_call_operand.vmem [shape: bf16[8,128], index: 6, kind: input, shape index: {}]   ;;  %s1906_s7 = inlined_call_operand.vmem [shape: f32[1,128], index: 7, kind: input, shape index: {}]   ;;  %s1907_s8 = inlined_call_operand.hbm [shape: f32[2,8,128], index: 8, kind: output, shape index: {}]  }
   0x1   :  { %14 = vsyncpa [#allocation6], 0 }
   0x2   :  { %15 = vsyncpa [#allocation4], 0  ;;  %s20_s29 = sshll.u32 %s1899_s0, 4  ;;  %s1576_s30 = smov [#allocation2]   ;;  %s21_s29 = int_to_ptr.hbm [resolvable:$true] %s20_s29 }
   0x3   :  { %s22_s9 = sshll.u32 %s1576_s30, 4  ;;  %s33_s12 = sshll.u32 %s1900_s1, 4  ;;  %s23_s9 = int_to_ptr.vmem [resolvable:$true] %s22_s9  ;;  %s34_s12 = int_to_ptr.hbm [resolvable:$true] %s33_s12 }
   0x4   :  { %s1577_s13 = smov 64   ;;  %s1578_s14 = smov 4  }
   0x5   :  { %28 = dma.hbm_to_vmem [thread:$0]  %s21_s29, 128, %s23_s9, [#allocation3], %s1577_s13, %s1577_s13, %s1578_s14  }
   0x6   :  { %s1579_s15 = smov [#allocation5]   ;;  %s1580_s17 = smov 192  }
   0x7   :  { %s35_s16 = sshll.u32 %s1579_s15, 4  ;;  %s1581_s18 = smov 12   ;;  %s36_s16 = int_to_ptr.vmem [resolvable:$true] %s35_s16 }
   0x8   :  { %41 = dma.hbm_to_vmem [thread:$0]  %s34_s12, 3072, %s36_s16, [#allocation6], %s1580_s17, %s1580_s17, %s1581_s18  }
   0x9   :  { %1570 = dma.done.wait [#allocation3], 128  }
   0xa   :  { %1571 = vsyncadd [#allocation3], 4294967168 }
   0xb   :  { %1572 = dma.done.wait [#allocation6], 3072  }
   0xc   :  { %1573 = vsyncadd [#allocation6], 4294964224  ;;  %v1290_v0 = vld [vmem:[#allocation5 + $0xa8] sm:$0xf]  ;;  %v1395_v1 = vld [vmem:[#allocation5 + $0xb0] sm:$0xf0] }
   0xd   :  { %v1394_v2 = vld [vmem:[#allocation5 + $0xac] sm:$0xf]  ;;  %v1291_v3 = vor.u32 %v1395_v1, %v1290_v0  ;;  %v1292_v4 = vld [vmem:[#allocation5 + $0xb4] sm:$0xf0]  ;;  %v1278_v5 = vld [vmem:[#allocation5 + $0x90] sm:$0xf] }
   0xe   :  { %v1392_v6 = vld [vmem:[#allocation5 + $0x98] sm:$0xf0]  ;;  %v1295_v7 = vor.u32 %v1394_v2, %v1292_v4  ;;  %v1391_v8 = vld [vmem:[#allocation5 + $0x94] sm:$0xf]  ;;  %v1280_v9 = vld [vmem:[#allocation5 + $0x9c] sm:$0xf0] }
   0xf   :  { %231 = vmatpush.bf16.msra.mxu0 %v1291_v3  ;;  %v1279_v10 = vor.u32 %v1392_v6, %v1278_v5  ;;  %v1283_v11 = vor.u32 %v1391_v8, %v1280_v9  ;;  %v1266_v12 = vld [vmem:[#allocation5 + $0x78] sm:$0xf]  ;;  %v1389_v13 = vld [vmem:[#allocation5 + $0x80] sm:$0xf0]  ;;  %v1388_v14 = vld [vmem:[#allocation5 + $0x7c] sm:$0xf] }
  0x10   :  { %245 = vmatpush.bf16.msra.mxu1 %v1295_v7  ;;  %v1268_v15 = vld [vmem:[#allocation5 + $0x84] sm:$0xf0]  ;;  %v1267_v16 = vor.u32 %v1389_v13, %v1266_v12  ;;  %v1254_v18 = vld [vmem:[#allocation5 + $0x60] sm:$0xf]  ;;  %v1386_v19 = vld [vmem:[#allocation5 + $0x68] sm:$0xf0] }
  0x11   :  { %v1271_v17 = vor.u32 %v1388_v14, %v1268_v15  ;;  %v1385_v20 = vld [vmem:[#allocation5 + $0x64] sm:$0xf]  ;;  %v1256_v21 = vld [vmem:[#allocation5 + $0x6c] sm:$0xf0]  ;;  %v1255_v22 = vor.u32 %v1386_v19, %v1254_v18  ;;  %v1242_v23 = vld [vmem:[#allocation5 + $0x48] sm:$0xf] }
  0x12   :  { %v1383_v24 = vld [vmem:[#allocation5 + $0x50] sm:$0xf0]  ;;  %v1259_v26 = vor.u32 %v1385_v20, %v1256_v21  ;;  %v1382_v27 = vld [vmem:[#allocation5 + $0x4c] sm:$0xf]  ;;  %v1244_v28 = vld [vmem:[#allocation5 + $0x54] sm:$0xf0] }
  0x13   :  { %232 = vmatpush.bf16.msra.mxu0 %v1279_v10  ;;  %v1404_v25 = vld [vmem:[%s1903_s4 + $0x38] sm:$0xff]  ;;  %v1403_v29 = vld [vmem:[%s1903_s4 + $0x30] sm:$0xff]  ;;  %v1243_v30 = vor.u32 %v1383_v24, %v1242_v23  ;;  %v1247_v31 = vor.u32 %v1382_v27, %v1244_v28  ;;  %v1380_v33 = vld [vmem:[#allocation5 + $0x38] sm:$0xf0]  ;;  %vm518_vm0 = vcmask 64512   ;;  %vm860_vm1 = vcmask 1043456  }
  0x14   :  { %246 = vmatpush.bf16.msra.mxu1 %v1283_v11  ;;  %1413 = vmatpush.bf16.msra.mxu3 %v1404_v25  ;;  %v1230_v32 = vld [vmem:[#allocation5 + $0x30] sm:$0xf]  ;;  %v1379_v34 = vld [vmem:[#allocation5 + $0x34] sm:$0xf]  ;;  %v1232_v35 = vld [vmem:[#allocation5 + $0x3c] sm:$0xf0] }
  0x15   :  { %v1402_v36 = vld [vmem:[%s1903_s4 + $0x28] sm:$0xff]  ;;  %v1231_v37 = vor.u32 %v1380_v33, %v1230_v32  ;;  %v1235_v38 = vor.u32 %v1379_v34, %v1232_v35  ;;  %v1218_v39 = vld [vmem:[#allocation5 + $0x18] sm:$0xf]  ;;  %v1376_v41 = vld [vmem:[#allocation5 + $0x1c] sm:$0xf]  ;;  %vm1093_vm2 = vcmask 1041409  }
  0x16   :  { %v1377_v40 = vld [vmem:[#allocation5 + $0x20] sm:$0xf0]  ;;  %v1220_v42 = vld [vmem:[#allocation5 + $0x24] sm:$0xf0]  ;;  %v1401_v43 = vld [vmem:[%s1903_s4 + $0x20] sm:$0xff]  ;;  %vm1095_vm3 = vcmask 1042434  }
  0x17   :  { %233 = vmatpush.bf16.msra.mxu0 %v1267_v16  ;;  %v1219_v44 = vor.u32 %v1377_v40, %v1218_v39  ;;  %v1223_v45 = vor.u32 %v1376_v41, %v1220_v42  ;;  %v1206_v46 = vld [vmem:[#allocation5] sm:$0xf]  ;;  %v1374_v47 = vld [vmem:[#allocation5 + $0x8] sm:$0xf0]  ;;  %v1373_v48 = vld [vmem:[#allocation5 + $0x4] sm:$0xf] }
  0x18   :  { %247 = vmatpush.bf16.msra.mxu1 %v1271_v17  ;;  %1414 = vmatpush.bf16.msra.mxu3 %v1403_v29  ;;  %v1208_v49 = vld [vmem:[#allocation5 + $0xc] sm:$0xf0]  ;;  %v1207_v51 = vor.u32 %v1374_v47, %v1206_v46  ;;  %v1651_v53 = vld [vmem:[#allocation2] sm:$0xff]  ;;  %v1399_v54 = vld [vmem:[%s1903_s4 + $0x10] sm:$0xff]  ;;  %vm1097_vm4 = vcmask 1043459   ;;  %vm1099_vm5 = vcmask 1044484  }
  0x19   :  { %v1400_v50 = vld [vmem:[%s1903_s4 + $0x18] sm:$0xff]  ;;  %v1211_v52 = vor.u32 %v1373_v48, %v1208_v49  ;;  %v1398_v55 = vld [vmem:[%s1903_s4 + $0x8] sm:$0xff]  ;;  %v1397_v56 = vld [vmem:[%s1903_s4] sm:$0xff]  ;;  %vm1101_vm6 = vcmask 1045509   ;;  %vm1103_vm7 = vcmask 1046534   ;;  %vm1105_vm8 = vcmask 1047559  }
  0x1a   :  { %s1582_s28 = smov [#allocation7]   ;;  %s1186_s10 = sshll.u32 %s1907_s8, 4  ;;  %s1187_s10 = int_to_ptr.hbm [resolvable:$true] %s1186_s10 }
  0x1b   :  { %234 = vmatpush.bf16.msra.mxu0 %v1255_v22  ;;  %s1184_s29 = sshll.u32 %s1582_s28, 4  ;;  %s1583_s4 = smov 128   ;;  %s1185_s29 = int_to_ptr.vmem [resolvable:$true] %s1184_s29 }
  0x1c   :  { %248 = vmatpush.bf16.msra.mxu1 %v1259_v26  ;;  %1415 = vmatpush.bf16.msra.mxu3 %v1402_v36  ;;  %s1584_s11 = smov 8  }
  0x1f   :  { %235 = vmatpush.bf16.msra.mxu0 %v1243_v30 }
  0x20   :  { %249 = vmatpush.bf16.msra.mxu1 %v1247_v31  ;;  %1416 = vmatpush.bf16.msra.mxu3 %v1401_v43 }
  0x23   :  { %236 = vmatpush.bf16.msra.mxu0 %v1231_v37 }
  0x24   :  { %250 = vmatpush.bf16.msra.mxu1 %v1235_v38  ;;  %1417 = vmatpush.bf16.msra.mxu3 %v1400_v50 }
  0x27   :  { %237 = vmatpush.bf16.msra.mxu0 %v1219_v44 }
  0x28   :  { %251 = vmatpush.bf16.msra.mxu1 %v1223_v45  ;;  %1418 = vmatpush.bf16.msra.mxu3 %v1399_v54 }
  0x2b   :  { %238 = vmatpush.bf16.msra.mxu0 %v1207_v51 }
  0x2c   :  { %252 = vmatpush.bf16.msra.mxu1 %v1211_v52  ;;  %1419 = vmatpush.bf16.msra.mxu3 %v1398_v55 }
  0x2e   :  { %239 = vmatmul.bf16.vlgmr.msra.gmra.mxu0 %v1651_v53 }
  0x2f   :  { %253 = vmatmul.bf16.vlgmr.msra.gmra.mxu1 %v1651_v53 }
  0x30   :  { %469 = vmatpush.bf16.msrb.mxu1 %v1404_v25  ;;  %1420 = vmatpush.bf16.msra.mxu3 %v1397_v56 }
  0x34   :  { %470 = vmatpush.bf16.msrb.mxu1 %v1403_v29 }
  0x38   :  { %471 = vmatpush.bf16.msrb.mxu1 %v1402_v36 }
  0x3c   :  { %472 = vmatpush.bf16.msrb.mxu1 %v1401_v43 }
  0x40   :  { %473 = vmatpush.bf16.msrb.mxu1 %v1400_v50 }
  0x44   :  { %474 = vmatpush.bf16.msrb.mxu1 %v1399_v54 }
  0x48   :  { %475 = vmatpush.bf16.msrb.mxu1 %v1398_v55 }
  0x4c   :  { %476 = vmatpush.bf16.msrb.mxu1 %v1397_v56 }
  0xab   :  { %v240_v57 = vpop.f32.mrf.mxu0 }
  0xac   :  { %v275_v58 = vrot.slane %v240_v57, 1  ;;  %v289_v59 = vperm.slane %v240_v57, 0  ;;  %v278_v60 = vrot.slane %v240_v57, 4  ;;  %v279_v61 = vrot.slane %v240_v57, 5  ;;  %v254_v62 = vpop.f32.mrf.mxu1 }
  0xad   :  { %v276_v7 = vrot.slane %v240_v57, 2  ;;  %v277_v8 = vrot.slane %v240_v57, 3  ;;  %v280_v9 = vrot.slane %v240_v57, 6  ;;  %v281_v13 = vrot.slane %v240_v57, 7 }
  0xae   :  { %v290_v63 = vperm.slane %v275_v58, 0  ;;  %v321_v0 = vmul.f32 %v289_v59, %v254_v62  ;;  %v293_v1 = vperm.slane %v278_v60, 0  ;;  %v294_v2 = vperm.slane %v279_v61, 0 }
  0xaf   :  { %v291_v18 = vperm.slane %v276_v7, 0  ;;  %v292_v19 = vperm.slane %v277_v8, 0  ;;  %v295_v22 = vperm.slane %v280_v9, 0  ;;  %v296_v23 = vperm.slane %v281_v13, 0 }
  0xb0   :  { %v322_v3 = vmul.f32 %v290_v63, %v254_v62  ;;  %v337_v4 = vpack.c.bf16 %v321_v0, %v321_v0  ;;  %v325_v5 = vmul.f32 %v293_v1, %v254_v62  ;;  %v326_v6 = vmul.f32 %v294_v2, %v254_v62 }
  0xb1   :  { %v323_v24 = vmul.f32 %v291_v18, %v254_v62  ;;  %v324_v25 = vmul.f32 %v292_v19, %v254_v62  ;;  %v327_v26 = vmul.f32 %v295_v22, %v254_v62  ;;  %v328_v27 = vmul.f32 %v296_v23, %v254_v62  ;;  %v1667_v23 = vld [vmem:[%s1904_s5] ss:$0 sm:$0xff] }
  0xb2   :  { %v338_v10 = vpack.c.bf16 %v322_v3, %v322_v3  ;;  %v341_v11 = vpack.c.bf16 %v325_v5, %v325_v5  ;;  %v342_v12 = vpack.c.bf16 %v326_v6, %v326_v6  ;;  %v389_v14 = vunpack.c.l.b16 %v337_v4 }
  0xb3   :  { %v242_v28 = vpop.f32.mrf.mxu0  ;;  %v339_v29 = vpack.c.bf16 %v323_v24, %v323_v24  ;;  %v340_v30 = vpack.c.bf16 %v324_v25, %v324_v25  ;;  %v343_v31 = vpack.c.bf16 %v327_v26, %v327_v26  ;;  %v344_v32 = vpack.c.bf16 %v328_v27, %v328_v27  ;;  %v1286_v24 = vld [vmem:[#allocation5 + $0x98] sm:$0xf]  ;;  %v1393_v25 = vld [vmem:[#allocation5 + $0xa0] sm:$0xf0] }
  0xb4   :  { %v390_v15 = vunpack.c.l.b16 %v338_v10  ;;  %v393_v16 = vunpack.c.l.b16 %v341_v11  ;;  %v394_v17 = vunpack.c.l.b16 %v342_v12  ;;  %v282_v33 = vrot.slane %v242_v28, 1  ;;  %v256_v42 = vpop.f32.mrf.mxu1 }
  0xb5   :  { %v391_v34 = vunpack.c.l.b16 %v339_v29  ;;  %v392_v35 = vunpack.c.l.b16 %v340_v30  ;;  %v395_v36 = vunpack.c.l.b16 %v343_v31  ;;  %v396_v37 = vunpack.c.l.b16 %v344_v32  ;;  %v1274_v29 = vld [vmem:[#allocation5 + $0x80] sm:$0xf]  ;;  %v1390_v30 = vld [vmem:[#allocation5 + $0x88] sm:$0xf0] }
  0xb6   :  { %v405_v20 = vpack.c.b16 %v390_v15, %v389_v14  ;;  %v407_v21 = vpack.c.b16 %v394_v17, %v393_v16  ;;  %v298_v40 = vperm.slane %v282_v33, 0  ;;  %v297_v41 = vperm.slane %v242_v28, 0 }
  0xb7   :  { %v406_v38 = vpack.c.b16 %v392_v35, %v391_v34  ;;  %v408_v39 = vpack.c.b16 %v396_v37, %v395_v36  ;;  %v283_v48 = vrot.slane %v242_v28, 2  ;;  %v284_v49 = vrot.slane %v242_v28, 3  ;;  %v1262_v36 = vld [vmem:[#allocation5 + $0x68] sm:$0xf]  ;;  %v1387_v37 = vld [vmem:[#allocation5 + $0x70] sm:$0xf0] }
  0xb8   :  { %477 = vmatmul.bf16.vlgmr.msrb.gmra.mxu1 %v405_v20  ;;  %487 = vmatmul.bf16.vlgmr.msra.gmra.mxu3 %v407_v21  ;;  %v330_v43 = vmul.f32 %v298_v40, %v256_v42  ;;  %v329_v44 = vmul.f32 %v297_v41, %v256_v42  ;;  %v285_v61 = vrot.slane %v242_v28, 4  ;;  %v286_v62 = vrot.slane %v242_v28, 5  ;;  %v1298_v20 = vld [vmem:[#allocation5 + $0xb0] sm:$0xf]  ;;  %v1396_v21 = vld [vmem:[#allocation5 + $0xb8] sm:$0xf0] }
  0xb9   :  { %v299_v52 = vperm.slane %v283_v48, 0  ;;  %v300_v54 = vperm.slane %v284_v49, 0  ;;  %v287_v8 = vrot.slane %v242_v28, 6  ;;  %v288_v9 = vrot.slane %v242_v28, 7 }
  0xba   :  { %v346_v45 = vpack.c.bf16 %v330_v43, %v330_v43  ;;  %v345_v46 = vpack.c.bf16 %v329_v44, %v329_v44  ;;  %v301_v0 = vperm.slane %v285_v61, 0  ;;  %v302_v1 = vperm.slane %v286_v62, 0 }
  0xbb   :  { %v331_v55 = vmul.f32 %v299_v52, %v256_v42  ;;  %v332_v56 = vmul.f32 %v300_v54, %v256_v42  ;;  %v303_v11 = vperm.slane %v287_v8, 0  ;;  %v304_v12 = vperm.slane %v288_v9, 0  ;;  %v1378_v8 = vld [vmem:[#allocation5 + $0x28] sm:$0xf0] }
  0xbc   :  { %v398_v47 = vunpack.c.l.b16 %v346_v45  ;;  %v397_v50 = vunpack.c.l.b16 %v345_v46  ;;  %v333_v2 = vmul.f32 %v301_v0, %v256_v42  ;;  %v334_v3 = vmul.f32 %v302_v1, %v256_v42  ;;  %v1250_v46 = vld [vmem:[#allocation5 + $0x50] sm:$0xf] }
  0xbd   :  { %v347_v57 = vpack.c.bf16 %v331_v55, %v331_v55  ;;  %v348_v58 = vpack.c.bf16 %v332_v56, %v332_v56  ;;  %v335_v13 = vmul.f32 %v303_v11, %v256_v42  ;;  %v336_v14 = vmul.f32 %v304_v12, %v256_v42 }
  0xbe   :  { %v409_v51 = vpack.c.b16 %v398_v47, %v397_v50  ;;  %v349_v4 = vpack.c.bf16 %v333_v2, %v333_v2  ;;  %v350_v5 = vpack.c.bf16 %v334_v3, %v334_v3  ;;  %v1299_v22 = vor.u32 %v1396_v21, %v1298_v20  ;;  %v1384_v47 = vld [vmem:[#allocation5 + $0x58] sm:$0xf0] }
  0xbf   :  { %v399_v59 = vunpack.c.l.b16 %v347_v57  ;;  %v400_v60 = vunpack.c.l.b16 %v348_v58  ;;  %v351_v15 = vpack.c.bf16 %v335_v13, %v335_v13  ;;  %v352_v16 = vpack.c.bf16 %v336_v14, %v336_v14  ;;  %v1238_v57 = vld [vmem:[#allocation5 + $0x38] sm:$0xf]  ;;  %v1381_v58 = vld [vmem:[#allocation5 + $0x40] sm:$0xf0] }
  0xc0   :  { %v401_v6 = vunpack.c.l.b16 %v349_v4  ;;  %v402_v7 = vunpack.c.l.b16 %v350_v5  ;;  %259 = vmatpush.bf16.msra.mxu2 %v1299_v22  ;;  %v1287_v26 = vor.u32 %v1393_v25, %v1286_v24  ;;  %v1275_v32 = vor.u32 %v1390_v30, %v1274_v29 }
  0xc1   :  { %v410_v63 = vpack.c.b16 %v400_v60, %v399_v59  ;;  %v403_v17 = vunpack.c.l.b16 %v351_v15  ;;  %v404_v18 = vunpack.c.l.b16 %v352_v16  ;;  %v1251_v49 = vor.u32 %v1384_v47, %v1250_v46 }
  0xc2   :  { %v411_v10 = vpack.c.b16 %v402_v7, %v401_v6  ;;  %v1239_v60 = vor.u32 %v1381_v58, %v1238_v57  ;;  %v1226_v6 = vld [vmem:[#allocation5 + $0x20] sm:$0xf] }
  0xc3   :  { %v412_v19 = vpack.c.b16 %v404_v18, %v403_v17  ;;  %v1227_v13 = vor.u32 %v1378_v8, %v1226_v6  ;;  %v1214_v17 = vld [vmem:[#allocation5 + $0x8] sm:$0xf]  ;;  %v1375_v18 = vld [vmem:[#allocation5 + $0x10] sm:$0xf0] }
  0xc4   :  { %260 = vmatpush.bf16.msra.mxu2 %v1287_v26  ;;  %v1215_v21 = vor.u32 %v1375_v18, %v1214_v17 }
  0xc8   :  { %482 = vmatmul.bf16.gmra.mxu1 %v406_v38  ;;  %492 = vmatmul.bf16.gmra.mxu3 %v408_v39  ;;  %v1263_v39 = vor.u32 %v1387_v37, %v1262_v36  ;;  %v831_v37 = vld [vmem:[%s1905_s6] sm:$0xf] }
  0xc9   :  { %261 = vmatpush.bf16.msra.mxu2 %v1275_v32 }
  0xcd   :  { %262 = vmatpush.bf16.msra.mxu2 %v1263_v39 }
  0xd1   :  { %263 = vmatpush.bf16.msra.mxu2 %v1251_v49 }
  0xd5   :  { %264 = vmatpush.bf16.msra.mxu2 %v1239_v60 }
  0xd8   :  { %497 = vmatmul.bf16.gmra.mxu3 %v409_v51 }
  0xd9   :  { %265 = vmatpush.bf16.msra.mxu2 %v1227_v13 }
  0xdd   :  { %266 = vmatpush.bf16.msra.mxu2 %v1215_v21 }
  0xe0   :  { %267 = vmatmul.bf16.vlgmr.msra.gmra.mxu2 %v1651_v53 }
  0xe8   :  { %502 = vmatmul.bf16.gmra.mxu3 %v410_v63 }
  0xf8   :  { %507 = vmatmul.bf16.gmra.mxu3 %v411_v10 }
 0x108   :  { %512 = vmatmul.bf16.gmra.mxu3 %v412_v19 }
 0x135   :  { %v478_v27 = vpop.f32.mrf.mxu1 }
 0x136   :  { %v479_v28 = vadd.f32 %v1667_v23, %v478_v27 }
 0x138   :  { %v519_v31 = vsel %vm518_vm0, %v479_v28, -inf }
 0x139   :  { %v520_v33 = vrot.slane %v519_v31, 4 }
 0x13b   :  { %v521_v34 = vmax.f32 %v519_v31, %v520_v33  ;;  %v488_v35 = vpop.f32.mrf.mxu3 }
 0x13c   :  { %v1672_v38 = vadd.f32 %v1667_v23, %v488_v35 }
 0x13d   :  { %v522_v40 = vrot.slane %v521_v34, 2  ;;  %v480_v41 = vpop.f32.mrf.mxu1 }
 0x13e   :  { %v547_v42 = vsel %vm518_vm0, %v1672_v38, -inf  ;;  %v481_v43 = vadd.f32 %v1667_v23, %v480_v41 }
 0x13f   :  { %v523_v44 = vmax.f32 %v521_v34, %v522_v40  ;;  %v548_v45 = vrot.slane %v547_v42, 4 }
 0x140   :  { %v526_v48 = vsel %vm518_vm0, %v481_v43, -inf }
 0x141   :  { %v524_v50 = vrot.slane %v523_v44, 1  ;;  %v527_v51 = vrot.slane %v526_v48, 4  ;;  %v549_v52 = vmax.f32 %v547_v42, %v548_v45 }
 0x143   :  { %v525_v54 = vmax.f32 %v523_v44, %v524_v50  ;;  %v528_v55 = vmax.f32 %v526_v48, %v527_v51  ;;  %v490_v56 = vpop.f32.mrf.mxu3  ;;  %v550_v0 = vrot.slane %v549_v52, 2 }
 0x144   :  { %v1679_v59 = vadd.f32 %v1667_v23, %v490_v56 }
 0x145   :  { %v631_v61 = vsub.f32 %v479_v28, %v525_v54  ;;  %v529_v62 = vrot.slane %v528_v55, 2  ;;  %v483_v63 = vpop.f32.mrf.mxu1  ;;  %v551_v11 = vmax.f32 %v549_v52, %v550_v0 }
 0x146   :  { %v554_v1 = vsel %vm518_vm0, %v1679_v59, -inf  ;;  %v1684_v2 = vadd.f32 %v1667_v23, %v483_v63 }
 0x147   :  { %v647_v3 = vmul.f32 1.442695, %v631_v61  ;;  %v530_v4 = vmax.f32 %v528_v55, %v529_v62  ;;  %v555_v5 = vrot.slane %v554_v1, 4  ;;  %v552_v26 = vrot.slane %v551_v11, 1 }
 0x148   :  { %v533_v7 = vsel %vm518_vm0, %v1684_v2, -inf }
 0x149   :  { %1434 = vpow2.f32 %v647_v3  ;;  %v531_v9 = vrot.slane %v530_v4, 1  ;;  %v556_v10 = vmax.f32 %v554_v1, %v555_v5  ;;  %v534_v12 = vrot.slane %v533_v7, 4 }
 0x14a   :  { %v553_v40 = vmax.f32 %v551_v11, %v552_v26 }
 0x14b   :  { %v532_v14 = vmax.f32 %v530_v4, %v531_v9  ;;  %v557_v15 = vrot.slane %v556_v10, 2  ;;  %v493_v16 = vpop.f32.mrf.mxu3  ;;  %v535_v19 = vmax.f32 %v533_v7, %v534_v12 }
 0x14c   :  { %v1689_v20 = vadd.f32 %v1667_v23, %v493_v16  ;;  %v635_v52 = vsub.f32 %v1672_v38, %v553_v40 }
 0x14d   :  { %v632_v22 = vsub.f32 %v481_v43, %v532_v14  ;;  %v558_v24 = vmax.f32 %v556_v10, %v557_v15  ;;  %v485_v25 = vpop.f32.mrf.mxu1  ;;  %v536_v27 = vrot.slane %v535_v19, 2  ;;  %v862_v43 = vsel %vm860_vm1, %v831_v37, 0 }
 0x14e   :  { %v561_v28 = vsel %vm518_vm0, %v1689_v20, -inf  ;;  %v1694_v29 = vadd.f32 %v1667_v23, %v485_v25  ;;  %871 = vmatpush.bf16.msrb.mxu0 %v862_v43  ;;  %1421 = vmatpush.bf16.msrb.mxu2 %v862_v43  ;;  %v655_v3 = vmul.f32 1.442695, %v635_v52 }
 0x14f   :  { %v1696_v30 = vpop.eup %1434  ;;  %v649_v31 = vmul.f32 1.442695, %v632_v22  ;;  %v559_v32 = vrot.slane %v558_v24, 1  ;;  %v562_v33 = vrot.slane %v561_v28, 4  ;;  %v537_v35 = vmax.f32 %v535_v19, %v536_v27 }
 0x150   :  { %v679_v34 = vsel %vm518_vm0, %v1696_v30, 0.0  ;;  %v540_v36 = vsel %vm518_vm0, %v1694_v29, -inf }
 0x151   :  { %v680_v39 = vrot.slane %v679_v34, 4  ;;  %1436 = vpow2.f32 %v649_v31  ;;  %v538_v41 = vrot.slane %v537_v35, 1  ;;  %v541_v42 = vrot.slane %v540_v36, 4 }
 0x152   :  { %v560_v45 = vmax.f32 %v558_v24, %v559_v32  ;;  %v563_v46 = vmax.f32 %v561_v28, %v562_v33 }
 0x153   :  { %v681_v44 = vadd.f32 %v680_v39, %v679_v34  ;;  %v495_v47 = vpop.f32.mrf.mxu3  ;;  %v539_v48 = vmax.f32 %v537_v35, %v538_v41  ;;  %v542_v49 = vmax.f32 %v540_v36, %v541_v42 }
 0x154   :  { %v1707_v50 = vadd.f32 %v1667_v23, %v495_v47  ;;  %v636_v53 = vsub.f32 %v1679_v59, %v560_v45  ;;  %v564_v60 = vrot.slane %v563_v46, 2 }
 0x155   :  { %v682_v51 = vrot.slane %v681_v44, 2  ;;  %v633_v54 = vsub.f32 %v1684_v2, %v539_v48  ;;  %v543_v55 = vrot.slane %v542_v49, 2 }
 0x156   :  { %v568_v56 = vsel %vm518_vm0, %v1707_v50, -inf  ;;  %v657_v6 = vmul.f32 1.442695, %v636_v53  ;;  %v565_v7 = vmax.f32 %v563_v46, %v564_v60 }
 0x157   :  { %v1713_v57 = vpop.eup %1436  ;;  %v683_v58 = vadd.f32 %v682_v51, %v681_v44  ;;  %v651_v62 = vmul.f32 1.442695, %v633_v54  ;;  %v544_v63 = vmax.f32 %v542_v49, %v543_v55  ;;  %v569_v0 = vrot.slane %v568_v56, 4 }
 0x158   :  { %v686_v61 = vsel %vm518_vm0, %v1713_v57, 0.0  ;;  %v566_v17 = vrot.slane %v565_v7, 1 }
 0x159   :  { %v684_v1 = vrot.slane %v683_v58, 1  ;;  %v687_v38 = vrot.slane %v686_v61, 4  ;;  %1438 = vpow2.f32 %v651_v62  ;;  %v545_v2 = vrot.slane %v544_v63, 1 }
 0x15a   :  { %v570_v4 = vmax.f32 %v568_v56, %v569_v0  ;;  %1440 = vpow2.f32 %v655_v3 }
 0x15b   :  { %v688_v5 = vadd.f32 %v687_v38, %v686_v61  ;;  %v498_v8 = vpop.f32.mrf.mxu3  ;;  %v546_v9 = vmax.f32 %v544_v63, %v545_v2  ;;  %v685_v11 = vadd.f32 %v684_v1, %v683_v58  ;;  %1442 = vpow2.f32 %v657_v6 }
 0x15c   :  { %v571_v10 = vrot.slane %v570_v4, 2  ;;  %v1719_v59 = vadd.f32 %v1667_v23, %v498_v8 }
 0x15d   :  { %v689_v12 = vrot.slane %v688_v5, 2  ;;  %v634_v13 = vsub.f32 %v1694_v29, %v546_v9  ;;  %1444 = vrcp.f32 %v685_v11  ;;  %v567_v29 = vmax.f32 %v565_v7, %v566_v17 }
 0x15e   :  { %v572_v14 = vmax.f32 %v570_v4, %v571_v10  ;;  %v575_v15 = vsel %vm518_vm0, %v1719_v59, -inf }
 0x15f   :  { %v690_v16 = vadd.f32 %v689_v12, %v688_v5  ;;  %v1724_v18 = vpop.eup %1438  ;;  %v653_v19 = vmul.f32 1.442695, %v634_v13  ;;  %v576_v22 = vrot.slane %v575_v15, 4  ;;  %v637_v43 = vsub.f32 %v1689_v20, %v567_v29 }
 0x160   :  { %v573_v21 = vrot.slane %v572_v14, 1  ;;  %v693_v25 = vsel %vm518_vm0, %v1724_v18, 0.0  ;;  %v1728_v32 = vpop.eup %1440 }
 0x161   :  { %v691_v24 = vrot.slane %v690_v16, 1  ;;  %v694_v26 = vrot.slane %v693_v25, 4  ;;  %1446 = vpow2.f32 %v653_v19  ;;  %v577_v34 = vmax.f32 %v575_v15, %v576_v22  ;;  %v1733_v36 = vpop.eup %1442 }
 0x162   :  { %v574_v27 = vmax.f32 %v572_v14, %v573_v21  ;;  %v707_v42 = vsel %vm518_vm0, %v1728_v32, 0.0  ;;  %v714_v46 = vsel %vm518_vm0, %v1733_v36, 0.0  ;;  %v659_v58 = vmul.f32 1.442695, %v637_v43 }
 0x163   :  { %v692_v28 = vadd.f32 %v691_v24, %v690_v16  ;;  %v500_v31 = vpop.f32.mrf.mxu3  ;;  %v695_v33 = vadd.f32 %v694_v26, %v693_v25  ;;  %v1445_v41 = vpop.eup %1444  ;;  %v578_v47 = vrot.slane %v577_v34, 2  ;;  %v708_v51 = vrot.slane %v707_v42, 4 }
 0x164   :  { %v1731_v35 = vadd.f32 %v1667_v23, %v500_v31  ;;  %v638_v39 = vsub.f32 %v1707_v50, %v574_v27  ;;  %v715_v56 = vrot.slane %v714_v46, 4  ;;  %v807_v60 = vmul.f32 %v1445_v41, %v1696_v30 }
 0x165   :  { %1448 = vrcp.f32 %v692_v28  ;;  %v696_v37 = vrot.slane %v695_v33, 2  ;;  %v579_v62 = vmax.f32 %v577_v34, %v578_v47  ;;  %v709_v8 = vadd.f32 %v708_v51, %v707_v42 }
 0x166   :  { %v582_v40 = vsel %vm518_vm0, %v1731_v35, -inf  ;;  %v661_v54 = vmul.f32 1.442695, %v638_v39  ;;  %v716_v5 = vadd.f32 %v715_v56, %v714_v46 }
 0x167   :  { %v583_v44 = vrot.slane %v582_v40, 4  ;;  %v1741_v45 = vpop.eup %1446  ;;  %v697_v48 = vadd.f32 %v696_v37, %v695_v33  ;;  %v580_v30 = vrot.slane %v579_v62, 1  ;;  %v710_v17 = vrot.slane %v709_v8, 2 }
 0x168   :  { %v700_v49 = vsel %vm518_vm0, %v1741_v45, 0.0  ;;  %1450 = vpow2.f32 %v661_v54  ;;  %v717_v13 = vrot.slane %v716_v5, 2 }
 0x169   :  { %v584_v50 = vmax.f32 %v582_v40, %v583_v44  ;;  %v701_v52 = vrot.slane %v700_v49, 4  ;;  %v698_v38 = vrot.slane %v697_v48, 1  ;;  %1452 = vpow2.f32 %v659_v58 }
 0x16a   :  { %v581_v19 = vmax.f32 %v579_v62, %v580_v30  ;;  %v718_v28 = vadd.f32 %v717_v13, %v716_v5  ;;  %v711_v34 = vadd.f32 %v710_v17, %v709_v8 }
 0x16b   :  { %v1449_v55 = vpop.eup %1448  ;;  %v585_v53 = vrot.slane %v584_v50, 2  ;;  %v503_v20 = vpop.f32.mrf.mxu3  ;;  %v702_v61 = vadd.f32 %v701_v52, %v700_v49  ;;  %v699_v12 = vadd.f32 %v698_v38, %v697_v48 }
 0x16c   :  { %v504_v63 = vadd.f32 %v1667_v23, %v503_v20  ;;  %v808_v0 = vmul.f32 %v1449_v55, %v1713_v57  ;;  %v639_v37 = vsub.f32 %v1719_v59, %v581_v19  ;;  %v719_v48 = vrot.slane %v718_v28, 1 }
 0x16d   :  { %v586_v1 = vmax.f32 %v584_v50, %v585_v53  ;;  %v703_v3 = vrot.slane %v702_v61, 2  ;;  %1454 = vrcp.f32 %v699_v12  ;;  %v712_v54 = vrot.slane %v711_v34, 1 }
 0x16e   :  { %v589_v2 = vsel %vm518_vm0, %v504_v63, -inf  ;;  %v823_v4 = vpack.c.bf16 %v808_v0, %v807_v60  ;;  %v1752_v16 = vpop.eup %1450  ;;  %v663_v51 = vmul.f32 1.442695, %v639_v37  ;;  %v720_v62 = vadd.f32 %v719_v48, %v718_v28 }
 0x16f   :  { %v587_v6 = vrot.slane %v586_v1, 1  ;;  %v590_v7 = vrot.slane %v589_v2, 4  ;;  %v704_v9 = vadd.f32 %v703_v3, %v702_v61  ;;  %v1756_v26 = vpop.eup %1452  ;;  %v728_v29 = vsel %vm518_vm0, %v1752_v16, 0.0 }
 0x170   :  { %1332 = vmatmul.msk.bf16.vlgmr.msrb.gmra.mxu0 %vm518_vm0, %v823_v4  ;;  %v721_v39 = vsel %vm518_vm0, %v1756_v26, 0.0  ;;  %v729_v42 = vrot.slane %v728_v29, 4  ;;  %v713_v3 = vadd.f32 %v712_v54, %v711_v34 }
 0x171   :  { %v588_v10 = vmax.f32 %v586_v1, %v587_v6  ;;  %v591_v11 = vmax.f32 %v589_v2, %v590_v7  ;;  %v705_v57 = vrot.slane %v704_v9, 1  ;;  %v722_v50 = vrot.slane %v721_v39, 4 }
 0x172   :  { %v730_v58 = vadd.f32 %v729_v42, %v728_v29 }
 0x173   :  { %v592_v14 = vrot.slane %v591_v11, 2  ;;  %v505_v15 = vpop.f32.mrf.mxu3  ;;  %v706_v22 = vadd.f32 %v705_v57, %v704_v9  ;;  %v640_v24 = vsub.f32 %v1731_v35, %v588_v10  ;;  %v1455_v43 = vpop.eup %1454 }
 0x174   :  { %v506_v21 = vadd.f32 %v1667_v23, %v505_v15  ;;  %v809_v20 = vmul.f32 %v1455_v43, %v1724_v18  ;;  %v731_v2 = vrot.slane %v730_v58, 2 }
 0x175   :  { %v593_v25 = vmax.f32 %v591_v11, %v592_v14  ;;  %1456 = vrcp.f32 %v706_v22  ;;  %v665_v35 = vmul.f32 1.442695, %v640_v24 }
 0x176   :  { %v596_v27 = vsel %vm518_vm0, %v506_v21, -inf  ;;  %v732_v11 = vadd.f32 %v731_v2, %v730_v58 }
 0x177   :  { %v594_v31 = vrot.slane %v593_v25, 1  ;;  %v597_v33 = vrot.slane %v596_v27, 4  ;;  %1458 = vpow2.f32 %v665_v35 }
 0x179   :  { %v595_v40 = vmax.f32 %v593_v25, %v594_v31  ;;  %v598_v41 = vmax.f32 %v596_v27, %v597_v33 }
 0x17b   :  { %v641_v44 = vsub.f32 %v504_v63, %v595_v40  ;;  %v599_v46 = vrot.slane %v598_v41, 2  ;;  %v508_v47 = vpop.f32.mrf.mxu3  ;;  %v1457_v49 = vpop.eup %1456  ;;  %v723_v63 = vadd.f32 %v722_v50, %v721_v39  ;;  %v733_v39 = vrot.slane %v732_v11, 1 }
 0x17c   :  { %v509_v52 = vadd.f32 %v1667_v23, %v508_v47  ;;  %v810_v56 = vmul.f32 %v1457_v49, %v1741_v45 }
 0x17d   :  { %v667_v59 = vmul.f32 1.442695, %v641_v44  ;;  %v600_v55 = vmax.f32 %v598_v41, %v599_v46  ;;  %v1769_v4 = vpop.eup %1458  ;;  %v724_v18 = vrot.slane %v723_v63, 2 }
 0x17e   :  { %v603_v53 = vsel %vm518_vm0, %v509_v52, -inf  ;;  %v824_v0 = vpack.c.bf16 %v810_v56, %v809_v20  ;;  %v742_v12 = vsel %vm518_vm0, %v1769_v4, 0.0 }
 0x17f   :  { %1460 = vpow2.f32 %v667_v59  ;;  %v601_v60 = vrot.slane %v600_v55, 1  ;;  %v604_v61 = vrot.slane %v603_v53, 4  ;;  %v725_v19 = vadd.f32 %v724_v18, %v723_v63 }
 0x180   :  { %1462 = vpow2.f32 %v663_v51  ;;  %1333 = vmatmul.msk.bf16.gmra.mxu0 %vm518_vm0, %v824_v0  ;;  %v743_v28 = vrot.slane %v742_v12, 4  ;;  %v734_v59 = vadd.f32 %v733_v39, %v732_v11 }
 0x181   :  { %v602_v1 = vmax.f32 %v600_v55, %v601_v60  ;;  %v605_v38 = vmax.f32 %v603_v53, %v604_v61  ;;  %1464 = vrcp.f32 %v720_v62  ;;  %v726_v47 = vrot.slane %v725_v19, 1 }
 0x182   :  { %1466 = vrcp.f32 %v713_v3  ;;  %v744_v48 = vadd.f32 %v743_v28, %v742_v12 }
 0x183   :  { %v642_v45 = vsub.f32 %v506_v21, %v602_v1  ;;  %v606_v5 = vrot.slane %v605_v38, 2  ;;  %v510_v6 = vpop.f32.mrf.mxu3  ;;  %v727_v60 = vadd.f32 %v726_v47, %v725_v19 }
 0x184   :  { %v1772_v7 = vadd.f32 %v1667_v23, %v510_v6  ;;  %v745_v61 = vrot.slane %v744_v48, 2 }
 0x185   :  { %v1774_v8 = vpop.eup %1460  ;;  %v669_v9 = vmul.f32 1.442695, %v642_v45  ;;  %v607_v30 = vmax.f32 %v605_v38, %v606_v5 }
 0x186   :  { %v1776_v10 = vpop.eup %1462  ;;  %v749_v57 = vsel %vm518_vm0, %v1774_v8, 0.0  ;;  %v610_v13 = vsel %vm518_vm0, %v1772_v7, -inf  ;;  %v746_v18 = vadd.f32 %v745_v61, %v744_v48 }
 0x187   :  { %v750_v14 = vrot.slane %v749_v57, 4  ;;  %1468 = vpow2.f32 %v669_v9  ;;  %v608_v15 = vrot.slane %v607_v30, 1  ;;  %v611_v17 = vrot.slane %v610_v13, 4  ;;  %v1465_v21 = vpop.eup %1464 }
 0x188   :  { %v735_v22 = vsel %vm518_vm0, %v1776_v10, 0.0  ;;  %v1467_v29 = vpop.eup %1466  ;;  %v812_v41 = vmul.f32 %v1465_v21, %v1733_v36 }
 0x189   :  { %v751_v24 = vadd.f32 %v750_v14, %v749_v57  ;;  %v609_v25 = vmax.f32 %v607_v30, %v608_v15  ;;  %v612_v27 = vmax.f32 %v610_v13, %v611_v17  ;;  %v736_v35 = vrot.slane %v735_v22, 4 }
 0x18a   :  { %v811_v51 = vmul.f32 %v1467_v29, %v1728_v32 }
 0x18b   :  { %v752_v31 = vrot.slane %v751_v24, 2  ;;  %v643_v33 = vsub.f32 %v509_v52, %v609_v25  ;;  %v613_v34 = vrot.slane %v612_v27, 2  ;;  %v513_v37 = vpop.f32.mrf.mxu3  ;;  %v737_v36 = vadd.f32 %v736_v35, %v735_v22 }
 0x18c   :  { %v1787_v40 = vadd.f32 %v1667_v23, %v513_v37  ;;  %v825_v56 = vpack.c.bf16 %v812_v41, %v811_v51 }
 0x18d   :  { %v1790_v42 = vpop.eup %1468  ;;  %v753_v43 = vadd.f32 %v752_v31, %v751_v24  ;;  %v671_v44 = vmul.f32 1.442695, %v643_v33  ;;  %v614_v46 = vmax.f32 %v612_v27, %v613_v34  ;;  %v738_v32 = vrot.slane %v737_v36, 2 }
 0x18e   :  { %v756_v49 = vsel %vm518_vm0, %v1790_v42, 0.0  ;;  %v617_v50 = vsel %vm518_vm0, %v1787_v40, -inf  ;;  %v747_v27 = vrot.slane %v746_v18, 1 }
 0x18f   :  { %v757_v52 = vrot.slane %v756_v49, 4  ;;  %1470 = vpow2.f32 %v671_v44  ;;  %v615_v54 = vrot.slane %v614_v46, 1  ;;  %v618_v55 = vrot.slane %v617_v50, 4 }
 0x190   :  { %v754_v58 = vrot.slane %v753_v43, 1  ;;  %1334 = vmatmul.msk.bf16.gmra.mxu0 %vm518_vm0, %v825_v56  ;;  %1472 = vrcp.f32 %v734_v59  ;;  %v739_v13 = vadd.f32 %v738_v32, %v737_v36  ;;  %v748_v47 = vadd.f32 %v747_v27, %v746_v18 }
 0x191   :  { %v758_v53 = vadd.f32 %v757_v52, %v756_v49  ;;  %v616_v20 = vmax.f32 %v614_v46, %v615_v54  ;;  %v619_v62 = vmax.f32 %v617_v50, %v618_v55  ;;  %1474 = vrcp.f32 %v727_v60 }
 0x192   :  { %v755_v45 = vadd.f32 %v754_v58, %v753_v43  ;;  %v740_v37 = vrot.slane %v739_v13, 1 }
 0x193   :  { %v759_v63 = vrot.slane %v758_v53, 2  ;;  %v644_v0 = vsub.f32 %v1772_v7, %v616_v20  ;;  %v515_v1 = vpop.f32.mrf.mxu3  ;;  %v620_v38 = vrot.slane %v619_v62, 2 }
 0x194   :  { %v516_v3 = vadd.f32 %v1667_v23, %v515_v1  ;;  %v741_v51 = vadd.f32 %v740_v37, %v739_v13 }
 0x195   :  { %v1800_v2 = vpop.eup %1470  ;;  %v760_v5 = vadd.f32 %v759_v63, %v758_v53  ;;  %v673_v6 = vmul.f32 1.442695, %v644_v0  ;;  %v621_v30 = vmax.f32 %v619_v62, %v620_v38 }
 0x196   :  { %v763_v9 = vsel %vm518_vm0, %v1800_v2, 0.0  ;;  %v624_v11 = vsel %vm518_vm0, %v516_v3, -inf  ;;  %v1473_v23 = vpop.eup %1472 }
 0x197   :  { %v761_v7 = vrot.slane %v760_v5, 1  ;;  %v764_v12 = vrot.slane %v763_v9, 4  ;;  %1476 = vpow2.f32 %v673_v6  ;;  %v625_v57 = vrot.slane %v624_v11, 4  ;;  %v1475_v22 = vpop.eup %1474 }
 0x198   :  { %v622_v14 = vrot.slane %v621_v30, 1  ;;  %1478 = vrcp.f32 %v755_v45  ;;  %v814_v29 = vmul.f32 %v1473_v23, %v1752_v16  ;;  %v813_v41 = vmul.f32 %v1475_v22, %v1756_v26 }
 0x199   :  { %v762_v15 = vadd.f32 %v761_v7, %v760_v5  ;;  %v765_v17 = vadd.f32 %v764_v12, %v763_v9  ;;  %v626_v19 = vmax.f32 %v624_v11, %v625_v57 }
 0x19a   :  { %v623_v21 = vmax.f32 %v621_v30, %v622_v14  ;;  %v826_v48 = vpack.c.bf16 %v814_v29, %v813_v41 }
 0x19b   :  { %1480 = vrcp.f32 %v762_v15  ;;  %v766_v24 = vrot.slane %v765_v17, 2  ;;  %v627_v25 = vrot.slane %v626_v19, 2 }
 0x19c   :  { %v645_v28 = vsub.f32 %v1787_v40, %v623_v21 }
 0x19d   :  { %v1477_v31 = vpop.eup %1476  ;;  %v767_v33 = vadd.f32 %v766_v24, %v765_v17  ;;  %v628_v34 = vmax.f32 %v626_v19, %v627_v25  ;;  %v1826_v25 = vpop.f32.mrf.mxu2 }
 0x19e   :  { %v770_v39 = vsel %vm518_vm0, %v1477_v31, 0.0  ;;  %v675_v35 = vmul.f32 1.442695, %v645_v28  ;;  %v1479_v43 = vpop.eup %1478 }
 0x19f   :  { %v771_v44 = vrot.slane %v770_v39, 4  ;;  %v629_v46 = vrot.slane %v628_v34, 1  ;;  %v768_v16 = vrot.slane %v767_v33, 1  ;;  %v817_v52 = vmul.f32 %v1479_v43, %v1774_v8 }
 0x1a0   :  { %1482 = vpow2.f32 %v675_v35  ;;  %1335 = vmatmul.msk.bf16.gmra.mxu0 %vm518_vm0, %v826_v48 }
 0x1a1   :  { %v1481_v49 = vpop.eup %1480  ;;  %v772_v50 = vadd.f32 %v771_v44, %v770_v39  ;;  %v630_v40 = vmax.f32 %v628_v34, %v629_v46  ;;  %1484 = vrcp.f32 %v748_v47  ;;  %v769_v58 = vadd.f32 %v768_v16, %v767_v33 }
 0x1a2   :  { %v818_v54 = vmul.f32 %v1481_v49, %v1790_v42  ;;  %1486 = vrcp.f32 %v741_v51 }
 0x1a3   :  { %v773_v59 = vrot.slane %v772_v50, 2  ;;  %v646_v36 = vsub.f32 %v516_v3, %v630_v40 }
 0x1a4   :  { %v828_v26 = vpack.c.bf16 %v818_v54, %v817_v52 }
 0x1a5   :  { %v774_v55 = vadd.f32 %v773_v59, %v772_v50  ;;  %v677_v56 = vmul.f32 1.442695, %v646_v36 }
 0x1a6   :  { %v1483_v53 = vpop.eup %1482  ;;  %1337 = vmatmul.msk.bf16.vlgmr.msrb.gmra.mxu2 %vm518_vm0, %v828_v26 }
 0x1a7   :  { %v777_v20 = vsel %vm518_vm0, %v1483_v53, 0.0  ;;  %1488 = vpow2.f32 %v677_v56  ;;  %v775_v60 = vrot.slane %v774_v55, 1  ;;  %v1485_v62 = vpop.eup %1484 }
 0x1a8   :  { %v778_v61 = vrot.slane %v777_v20, 4  ;;  %1490 = vrcp.f32 %v769_v58  ;;  %v1487_v63 = vpop.eup %1486  ;;  %v816_v1 = vmul.f32 %v1485_v62, %v1769_v4  ;;  %v1835_v58 = vpop.f32.mrf.mxu2 }
 0x1a9   :  { %v776_v8 = vadd.f32 %v775_v60, %v774_v55  ;;  %v815_v45 = vmul.f32 %v1487_v63, %v1776_v10 }
 0x1aa   :  { %v779_v42 = vadd.f32 %v778_v61, %v777_v20  ;;  %v1412_v61 = vld [vmem:[%s1901_s2 + $0x38] sm:$0xff] }
 0x1ab   :  { %1492 = vrcp.f32 %v776_v8  ;;  %v827_v18 = vpack.c.bf16 %v816_v1, %v815_v45  ;;  %1164 = vmatpush.bf16.msra.mxu1 %v1412_v61  ;;  %v1411_v8 = vld [vmem:[%s1901_s2 + $0x30] sm:$0xff]  ;;  %v1410_v1 = vld [vmem:[%s1901_s2 + $0x28] sm:$0xff] }
 0x1ac   :  { %v780_v0 = vrot.slane %v779_v42, 2 }
 0x1ad   :  { %v1489_v32 = vpop.eup %1488 }
 0x1ae   :  { %v781_v38 = vadd.f32 %v780_v0, %v779_v42  ;;  %v784_v3 = vsel %vm518_vm0, %v1489_v32, 0.0  ;;  %v1491_v5 = vpop.eup %1490 }
 0x1af   :  { %v785_v6 = vrot.slane %v784_v3, 4  ;;  %v819_v7 = vmul.f32 %v1491_v5, %v1800_v2  ;;  %v1824_v2 = vld [vmem:[%s1906_s7] ss:$0 sm:$0xff]  ;;  %1165 = vmatpush.bf16.msra.mxu1 %v1411_v8 }
 0x1b0   :  { %v782_v11 = vrot.slane %v781_v38, 1  ;;  %1336 = vmatmul.msk.bf16.gmra.mxu0 %vm518_vm0, %v827_v18 }
 0x1b1   :  { %v1493_v9 = vpop.eup %1492  ;;  %v786_v30 = vadd.f32 %v785_v6, %v784_v3 }
 0x1b2   :  { %v820_v12 = vmul.f32 %v1493_v9, %v1477_v31  ;;  %v783_v14 = vadd.f32 %v782_v11, %v781_v38 }
 0x1b3   :  { %v787_v57 = vrot.slane %v786_v30, 2  ;;  %1166 = vmatpush.bf16.msra.mxu1 %v1410_v1  ;;  %v1405_v1 = vld [vmem:[%s1901_s2] sm:$0xff] }
 0x1b4   :  { %v829_v13 = vpack.c.bf16 %v820_v12, %v819_v7  ;;  %1494 = vrcp.f32 %v783_v14  ;;  %v1409_v12 = vld [vmem:[%s1901_s2 + $0x20] sm:$0xff] }
 0x1b5   :  { %v788_v4 = vadd.f32 %v787_v57, %v786_v30 }
 0x1b6   :  { %1338 = vmatmul.msk.bf16.gmra.mxu2 %vm518_vm0, %v829_v13 }
 0x1b7   :  { %v789_v23 = vrot.slane %v788_v4, 1  ;;  %1167 = vmatpush.bf16.msra.mxu1 %v1409_v12 }
 0x1b9   :  { %v790_v15 = vadd.f32 %v789_v23, %v788_v4 }
 0x1ba   :  { %v1495_v10 = vpop.eup %1494 }
 0x1bb   :  { %1496 = vrcp.f32 %v790_v15  ;;  %v821_v19 = vmul.f32 %v1495_v10, %v1483_v53 }
 0x1c1   :  { %v1497_v17 = vpop.eup %1496 }
 0x1c2   :  { %v822_v21 = vmul.f32 %v1497_v17, %v1489_v32 }
 0x1c4   :  { %v830_v22 = vpack.c.bf16 %v822_v21, %v821_v19 }
 0x1c6   :  { %1339 = vmatmul.msk.bf16.gmra.mxu2 %vm518_vm0, %v830_v22 }
 0x1ed   :  { %v873_v24 = vpop.f32.mrf.mxu0 }
 0x1ee   :  { %v874_v27 = vadd.f32 %v1824_v2, %v873_v24 }
 0x1f0   :  { %v913_v28 = vmul.f32 %v874_v27, %v1826_v25  ;;  %v1408_v27 = vld [vmem:[%s1901_s2 + $0x18] sm:$0xff] }
 0x1f1   :  { %1168 = vmatpush.bf16.msra.mxu1 %v1408_v27 }
 0x1f2   :  { %v929_v29 = vrot.slane %v913_v28, 4 }
 0x1f4   :  { %v930_v31 = vadd.f32 %v929_v29, %v913_v28 }
 0x1f5   :  { %v875_v33 = vpop.f32.mrf.mxu0 }
 0x1f6   :  { %v876_v34 = vadd.f32 %v1824_v2, %v875_v33  ;;  %v931_v37 = vrot.slane %v930_v31, 2 }
 0x1f8   :  { %v914_v39 = vmul.f32 %v876_v34, %v1826_v25  ;;  %v932_v35 = vadd.f32 %v931_v37, %v930_v31 }
 0x1fa   :  { %v935_v41 = vrot.slane %v914_v39, 4  ;;  %v933_v43 = vrot.slane %v932_v35, 1 }
 0x1fc   :  { %v936_v44 = vadd.f32 %v935_v41, %v914_v39  ;;  %v934_v48 = vadd.f32 %v933_v43, %v932_v35 }
 0x1fd   :  { %v878_v47 = vpop.f32.mrf.mxu0 }
 0x1fe   :  { %v937_v46 = vrot.slane %v936_v44, 2  ;;  %v1025_v51 = vpack.c.bf16 %v934_v48, %v934_v48  ;;  %v879_v3 = vadd.f32 %v1824_v2, %v878_v47  ;;  %v1407_v48 = vld [vmem:[%s1901_s2 + $0x10] sm:$0xff] }
 0x1ff   :  { %1169 = vmatpush.bf16.msra.mxu1 %v1407_v48 }
 0x200   :  { %v938_v49 = vadd.f32 %v937_v46, %v936_v44  ;;  %v1077_v54 = vunpack.c.l.b16 %v1025_v51  ;;  %v915_v4 = vmul.f32 %v879_v3, %v1826_v25 }
 0x202   :  { %v939_v50 = vrot.slane %v938_v49, 1  ;;  %v941_v29 = vrot.slane %v915_v4, 4 }
 0x204   :  { %v940_v40 = vadd.f32 %v939_v50, %v938_v49 }
 0x205   :  { %v880_v52 = vpop.f32.mrf.mxu0 }
 0x206   :  { %v1026_v16 = vpack.c.bf16 %v940_v40, %v940_v40  ;;  %v881_v45 = vadd.f32 %v1824_v2, %v880_v52  ;;  %v942_v40 = vadd.f32 %v941_v29, %v915_v4  ;;  %v1406_v52 = vld [vmem:[%s1901_s2 + $0x8] sm:$0xff] }
 0x207   :  { %1170 = vmatpush.bf16.msra.mxu1 %v1406_v52 }
 0x208   :  { %v1078_v59 = vunpack.c.l.b16 %v1026_v16  ;;  %v916_v14 = vmul.f32 %v881_v45, %v1826_v25 }
 0x20a   :  { %v1833_v36 = vsel %vm1093_vm2, %v1078_v59, %v1077_v54  ;;  %v947_v31 = vrot.slane %v916_v14, 4 }
 0x20b   :  { %1171 = vmatpush.bf16.msra.mxu1 %v1405_v1 }
 0x20c   :  { %v948_v51 = vadd.f32 %v947_v31, %v916_v14 }
 0x20d   :  { %v883_v26 = vpop.f32.mrf.mxu0 }
 0x20e   :  { %v884_v9 = vadd.f32 %v1824_v2, %v883_v26  ;;  %v949_v8 = vrot.slane %v948_v51, 2 }
 0x210   :  { %v917_v19 = vmul.f32 %v884_v9, %v1826_v25  ;;  %v950_v12 = vadd.f32 %v949_v8, %v948_v51 }
 0x212   :  { %v953_v43 = vrot.slane %v917_v19, 4 }
 0x215   :  { %v885_v55 = vpop.f32.mrf.mxu0 }
 0x216   :  { %v886_v30 = vadd.f32 %v1824_v2, %v885_v55  ;;  %v954_v55 = vadd.f32 %v953_v43, %v917_v19 }
 0x218   :  { %v918_v21 = vmul.f32 %v886_v30, %v1826_v25  ;;  %v955_v45 = vrot.slane %v954_v55, 2 }
 0x21a   :  { %v959_v44 = vrot.slane %v918_v21, 4 }
 0x21d   :  { %v888_v56 = vpop.f32.mrf.mxu0 }
 0x21e   :  { %v889_v23 = vadd.f32 %v1824_v2, %v888_v56  ;;  %v960_v56 = vadd.f32 %v959_v44, %v918_v21 }
 0x220   :  { %v919_v33 = vmul.f32 %v889_v23, %v1826_v25 }
 0x225   :  { %v890_v53 = vpop.f32.mrf.mxu0 }
 0x226   :  { %v891_v15 = vadd.f32 %v1824_v2, %v890_v53 }
 0x228   :  { %v920_v34 = vmul.f32 %v891_v15, %v1826_v25  ;;  %v965_v25 = vrot.slane %v919_v33, 4  ;;  %v956_v15 = vadd.f32 %v955_v45, %v954_v55 }
 0x229   :  { %v898_v20 = vpop.f32.mrf.mxu2 }
 0x22a   :  { %v899_v63 = vadd.f32 %v1824_v2, %v898_v20  ;;  %v971_v16 = vrot.slane %v920_v34, 4 }
 0x22c   :  { %v923_v11 = vmul.f32 %v899_v63, %v1835_v58  ;;  %v972_v63 = vadd.f32 %v971_v16, %v920_v34 }
 0x22d   :  { %v893_v60 = vpop.f32.mrf.mxu0 }
 0x22e   :  { %v894_v42 = vadd.f32 %v1824_v2, %v893_v60  ;;  %v989_v22 = vrot.slane %v923_v11, 4 }
 0x230   :  { %v921_v32 = vmul.f32 %v894_v42, %v1835_v58  ;;  %v990_v46 = vadd.f32 %v989_v22, %v923_v11  ;;  %v966_v42 = vadd.f32 %v965_v25, %v919_v33 }
 0x231   :  { %v900_v62 = vpop.f32.mrf.mxu2 }
 0x232   :  { %v901_v6 = vadd.f32 %v1824_v2, %v900_v62  ;;  %v977_v57 = vrot.slane %v921_v32, 4  ;;  %v991_v53 = vrot.slane %v990_v46, 2  ;;  %v943_v62 = vrot.slane %v942_v40, 2 }
 0x234   :  { %v924_v10 = vmul.f32 %v901_v6, %v1835_v58  ;;  %v978_v28 = vadd.f32 %v977_v57, %v921_v32  ;;  %v992_v6 = vadd.f32 %v991_v53, %v990_v46  ;;  %v967_v57 = vrot.slane %v966_v42, 2 }
 0x235   :  { %v895_v0 = vpop.f32.mrf.mxu0 }
 0x236   :  { %v896_v38 = vadd.f32 %v1824_v2, %v895_v0  ;;  %v995_v39 = vrot.slane %v924_v10, 4  ;;  %v979_v49 = vrot.slane %v978_v28, 2  ;;  %v968_v29 = vadd.f32 %v967_v57, %v966_v42 }
 0x238   :  { %v922_v18 = vmul.f32 %v896_v38, %v1835_v58  ;;  %v996_v54 = vadd.f32 %v995_v39, %v924_v10  ;;  %v980_v60 = vadd.f32 %v979_v49, %v978_v28  ;;  %v951_v28 = vrot.slane %v950_v12, 1 }
 0x239   :  { %v903_v5 = vpop.f32.mrf.mxu2  ;;  %v969_v25 = vrot.slane %v968_v29, 1 }
 0x23a   :  { %v904_v7 = vadd.f32 %v1824_v2, %v903_v5  ;;  %v983_v13 = vrot.slane %v922_v18, 4  ;;  %v997_v32 = vrot.slane %v996_v54, 2  ;;  %v961_v5 = vrot.slane %v960_v56, 2 }
 0x23b   :  { %v981_v9 = vrot.slane %v980_v60, 1  ;;  %v952_v51 = vadd.f32 %v951_v28, %v950_v12  ;;  %v970_v42 = vadd.f32 %v969_v25, %v968_v29 }
 0x23c   :  { %v984_v17 = vadd.f32 %v983_v13, %v922_v18  ;;  %v925_v24 = vmul.f32 %v904_v7, %v1835_v58  ;;  %v944_v7 = vadd.f32 %v943_v62, %v942_v40  ;;  %v973_v13 = vrot.slane %v972_v63, 2 }
 0x23d   :  { %v998_v4 = vadd.f32 %v997_v32, %v996_v54  ;;  %v962_v10 = vadd.f32 %v961_v5, %v960_v56  ;;  %v982_v21 = vadd.f32 %v981_v9, %v980_v60  ;;  %v1028_v8 = vpack.c.bf16 %v952_v51, %v952_v51 }
 0x23e   :  { %v985_v35 = vrot.slane %v984_v17, 2  ;;  %v1001_v47 = vrot.slane %v925_v24, 4  ;;  %v945_v27 = vrot.slane %v944_v7, 1  ;;  %v974_v31 = vadd.f32 %v973_v13, %v972_v63 }
 0x23f   :  { %v999_v34 = vrot.slane %v998_v4, 1  ;;  %v963_v43 = vrot.slane %v962_v10, 1  ;;  %v1080_v12 = vunpack.c.l.b16 %v1028_v8 }
 0x240   :  { %v986_v59 = vadd.f32 %v985_v35, %v984_v17  ;;  %v1002_v20 = vadd.f32 %v1001_v47, %v925_v24  ;;  %v993_v17 = vrot.slane %v992_v6, 1  ;;  %v1033_v47 = vpack.c.bf16 %v982_v21, %v982_v21 }
 0x241   :  { %v905_v37 = vpop.f32.mrf.mxu2  ;;  %v946_v40 = vadd.f32 %v945_v27, %v944_v7  ;;  %v975_v16 = vrot.slane %v974_v31, 1  ;;  %v1000_v52 = vadd.f32 %v999_v34, %v998_v4  ;;  %v964_v53 = vadd.f32 %v963_v43, %v962_v10 }
 0x242   :  { %v906_v41 = vadd.f32 %v1824_v2, %v905_v37  ;;  %v987_v38 = vrot.slane %v986_v59, 1  ;;  %v1003_v18 = vrot.slane %v1002_v20, 2  ;;  %v994_v44 = vadd.f32 %v993_v17, %v992_v6 }
 0x243   :  { %v1027_v62 = vpack.c.bf16 %v946_v40, %v946_v40  ;;  %v1030_v5 = vpack.c.bf16 %v964_v53, %v964_v53 }
 0x244   :  { %v926_v50 = vmul.f32 %v906_v41, %v1835_v58  ;;  %v988_v14 = vadd.f32 %v987_v38, %v986_v59  ;;  %v1004_v19 = vadd.f32 %v1003_v18, %v1002_v20  ;;  %v957_v41 = vrot.slane %v956_v15, 1 }
 0x245   :  { %v1035_v56 = vpack.c.bf16 %v994_v44, %v994_v44  ;;  %v1085_v20 = vunpack.c.l.b16 %v1033_v47  ;;  %v1079_v9 = vunpack.c.l.b16 %v1027_v62 }
 0x246   :  { %v1007_v26 = vrot.slane %v926_v50, 4  ;;  %v1034_v37 = vpack.c.bf16 %v988_v14, %v988_v14  ;;  %v1005_v46 = vrot.slane %v1004_v19, 1  ;;  %v958_v55 = vadd.f32 %v957_v41, %v956_v15 }
 0x247   :  { %v1082_v15 = vunpack.c.l.b16 %v1030_v5  ;;  %v1096_v21 = vsel %vm1095_vm3, %v1079_v9, %v1833_v36  ;;  %v1433_v36 = vld [vmem:[%s1902_s3] ss:$0 sm:$0xff] }
 0x248   :  { %v1008_v61 = vadd.f32 %v1007_v26, %v926_v50  ;;  %v1086_v54 = vunpack.c.l.b16 %v1034_v37  ;;  %v1029_v38 = vpack.c.bf16 %v958_v55, %v958_v55  ;;  %v1098_v27 = vsel %vm1097_vm4, %v1080_v12, %v1096_v21 }
 0x249   :  { %v908_v0 = vpop.f32.mrf.mxu2 }
 0x24a   :  { %v909_v3 = vadd.f32 %v1824_v2, %v908_v0  ;;  %v1009_v30 = vrot.slane %v1008_v61, 2  ;;  %v1036_v0 = vpack.c.bf16 %v1000_v52, %v1000_v52  ;;  %v1107_v1 = vsel %vm1093_vm2, %v1086_v54, %v1085_v20 }
 0x24b   :  { %v1081_v14 = vunpack.c.l.b16 %v1029_v38 }
 0x24c   :  { %v927_v11 = vmul.f32 %v909_v3, %v1835_v58  ;;  %v1010_v22 = vadd.f32 %v1009_v30, %v1008_v61  ;;  %v1087_v3 = vunpack.c.l.b16 %v1035_v56  ;;  %v1031_v30 = vpack.c.bf16 %v970_v42, %v970_v42 }
 0x24d   :  { %v1088_v13 = vunpack.c.l.b16 %v1036_v0 }
 0x24e   :  { %v1013_v23 = vrot.slane %v927_v11, 4  ;;  %v1011_v48 = vrot.slane %v1010_v22, 1 }
 0x250   :  { %v1014_v24 = vadd.f32 %v1013_v23, %v927_v11  ;;  %v1012_v60 = vadd.f32 %v1011_v48, %v1010_v22  ;;  %v1108_v11 = vsel %vm1095_vm3, %v1087_v3, %v1107_v1  ;;  %v1083_v22 = vunpack.c.l.b16 %v1031_v30 }
 0x251   :  { %v910_v33 = vpop.f32.mrf.mxu2  ;;  %v1109_v10 = vsel %vm1097_vm4, %v1088_v13, %v1108_v11 }
 0x252   :  { %v1015_v39 = vrot.slane %v1014_v24, 2  ;;  %v911_v35 = vadd.f32 %v1824_v2, %v910_v33  ;;  %v1006_v2 = vadd.f32 %v1005_v46, %v1004_v19  ;;  %v1038_v6 = vpack.c.bf16 %v1012_v60, %v1012_v60 }
 0x254   :  { %v1016_v49 = vadd.f32 %v1015_v39, %v1014_v24  ;;  %v928_v50 = vmul.f32 %v911_v35, %v1835_v58  ;;  %v976_v58 = vadd.f32 %v975_v16, %v974_v31  ;;  %v1037_v45 = vpack.c.bf16 %v1006_v2, %v1006_v2 }
 0x255   :  { %v1090_v17 = vunpack.c.l.b16 %v1038_v6  ;;  %v1100_v31 = vsel %vm1099_vm5, %v1081_v14, %v1098_v27 }
 0x256   :  { %v1017_v59 = vrot.slane %v1016_v49, 1  ;;  %v1019_v26 = vrot.slane %v928_v50, 4  ;;  %v1032_v57 = vpack.c.bf16 %v976_v58, %v976_v58  ;;  %v1089_v23 = vunpack.c.l.b16 %v1037_v45 }
 0x257   :  { %v1102_v37 = vsel %vm1101_vm6, %v1082_v15, %v1100_v31 }
 0x258   :  { %v1020_v61 = vadd.f32 %v1019_v26, %v928_v50  ;;  %v1018_v63 = vadd.f32 %v1017_v59, %v1016_v49  ;;  %v1084_v28 = vunpack.c.l.b16 %v1032_v57  ;;  %v1110_v33 = vsel %vm1099_vm5, %v1089_v23, %v1109_v10 }
 0x259   :  { %v1111_v39 = vsel %vm1101_vm6, %v1090_v17, %v1110_v33  ;;  %v1104_v35 = vsel %vm1103_vm7, %v1083_v22, %v1102_v37 }
 0x25a   :  { %v1021_v32 = vrot.slane %v1020_v61, 2  ;;  %v1039_v7 = vpack.c.bf16 %v1018_v63, %v1018_v63  ;;  %v1106_v43 = vsel %vm1105_vm8, %v1084_v28, %v1104_v35 }
 0x25c   :  { %v1022_v18 = vadd.f32 %v1021_v32, %v1020_v61  ;;  %v1091_v24 = vunpack.c.l.b16 %v1039_v7 }
 0x25e   :  { %v1023_v4 = vrot.slane %v1022_v18, 1  ;;  %v1112_v41 = vsel %vm1103_vm7, %v1091_v24, %v1111_v39 }
 0x260   :  { %v1024_v19 = vadd.f32 %v1023_v4, %v1022_v18 }
 0x262   :  { %v1040_v29 = vpack.c.bf16 %v1024_v19, %v1024_v19 }
 0x264   :  { %v1092_v34 = vunpack.c.l.b16 %v1040_v29 }
 0x266   :  { %v1113_v44 = vsel %vm1105_vm8, %v1092_v34, %v1112_v41 }
 0x267   :  { %v1114_v46 = vpack.c.b16 %v1113_v44, %v1106_v43 }
 0x269   :  { %1172 = vmatmul.bf16.vlgmr.msra.gmra.mxu1 %v1114_v46 }
 0x2e6   :  { %v1173_v47 = vpop.f32.mrf.mxu1 }
 0x2e7   :  { %v1174_v48 = vadd.f32 %v1433_v36, %v1173_v47 }
 0x2e9   :  { %1178 = vst [vmem:[#allocation7] sm:$0xff] %v1174_v48 }
 0x2ee   :  { %v1175_v49 = vpop.f32.mrf.mxu1 }
 0x2ef   :  { %v1176_v50 = vadd.f32 %v1433_v36, %v1175_v49 }
 0x2f1   :  { %1179 = vst [vmem:[#allocation7 + $0x8] sm:$0xff] %v1176_v50 }
 0x2f2   :  { %1192 = dma.vmem_to_hbm [thread:$0]  %s1185_s29, 256, %s1187_s10, [#allocation4], %s1583_s4, %s1583_s4, %s1584_s11  }
 0x2f3   :  { %1574 = dma.done.wait [#allocation4], 256  }
 0x2f4   :  { %1575 = vsyncadd [#allocation4], 4294967040 }
 0x2f5   :  { %1197 = vsyncpa [#allocation3], 1 }
 0x2f6   :  { %1198 = vsyncpa [#allocation6], 1 }
 0x2f7   :  { %1199 = vsyncpa [#allocation4], 1 }

</bundles_post_ra>
